<compile_context>
chip_gen: v7x
topology: tpu7x:2x2x1
jax: 0.10.0
libtpu: 0.0.40
codegen_flags: <defaults>
</compile_context>

<pallas_src>
import jax
import jax.numpy as jnp
from jax.experimental import pallas as pl
from jax.experimental.pallas import tpu as pltpu


def _cdiv(a, b):
    return (a + b - 1) // b


def _round_up(x, m):
    return _cdiv(x, m) * m


def _hw_info():
    """(vmem_capacity_bytes, device_kind_lowercase) with safe fallbacks."""
    vmem = 64 * 1024 * 1024          # conservative: v7x physical VMEM
    kind = ""
    try:
        vmem = int(pltpu.get_tpu_info().vmem_capacity_bytes)
    except Exception:
        pass
    try:
        kind = jax.devices()[0].device_kind.lower()
    except Exception:
        pass
    return vmem, kind


# --------------------------------------------------------------------------
# Kernels
# --------------------------------------------------------------------------

def _ffn_resident_kernel(x_ref, w_ref, b_ref, o_ref):
    """One (tm, N) output slab; full (K, N) weight panel resident in VMEM."""
    acc = jnp.dot(x_ref[...], w_ref[...], preferred_element_type=jnp.float32)
    o_ref[...] = jnp.maximum(acc + b_ref[...], 0.0).astype(o_ref.dtype)


def _ffn_tiled_kernel(x_ref, w_ref, b_ref, o_ref, acc_ref):
    """One (tm, tn) output tile; K is the last (reduction) grid axis."""
    k = pl.program_id(2)

    @pl.when(k == 0)
    def _():
        # Initialize the accumulator with the broadcast bias (saves the
        # epilogue add).
        acc_ref[...] = jnp.broadcast_to(b_ref[...], acc_ref.shape)

    acc_ref[...] += jnp.dot(
        x_ref[...], w_ref[...], preferred_element_type=jnp.float32
    )

    @pl.when(k == pl.num_programs(2) - 1)
    def _():
        o_ref[...] = jnp.maximum(acc_ref[...], 0.0).astype(o_ref.dtype)


# --------------------------------------------------------------------------
# Wrapper
# --------------------------------------------------------------------------

def _pallas_ffn_2d(x2d, w, b, *, compute_dtype=jnp.bfloat16, out_dtype=None,
                   force_tiled=False):
    """x2d: (M, K), w: (K, N), b: (N,) -> relu(x2d @ w + b), f32-accumulated."""
    m, k = x2d.shape
    k2, n = w.shape
    assert k == k2, (k, k2)
    out_dtype = x2d.dtype if out_dtype is None else out_dtype
    out_bytes = jnp.dtype(out_dtype).itemsize
    cbytes = jnp.dtype(compute_dtype).itemsize

    vmem_cap, kind = _hw_info()
    is_v5 = "v5" in kind
    two_cores = "v7" in kind            # v7x has 2 TensorCores per chip

    # bf16 packs 2 rows per sublane -> M tiles must be multiples of 16.
    sub = 16 if jnp.dtype(compute_dtype) == jnp.dtype(jnp.bfloat16) else 8

    # Generation-aware tile maxima (v5e's 4x128 MXU / slower HBM saturate at
    # ~512; v6e/v7x need ~1024 to get past per-step overhead & HBM roofline).
    if is_v5:
        tm_max, tn_max, tk_max = 512, 512, 512
    else:
        tm_max, tn_max, tk_max = 1024, 1024, 512

    # Leave headroom under physical VMEM (v7x: 64 MiB -> 48 MiB limit;
    # v5e/v6e: 128 MiB -> 96 MiB limit).
    vmem_limit = min(int(vmem_cap * 3 // 4), 96 * 1024 * 1024)

    xc = x2d.astype(compute_dtype)
    wc = w.astype(compute_dtype)
    b2d = b.astype(jnp.float32).reshape(1, n)

    def pick_tm(tmax):
        nb = _cdiv(m, tmax)
        if two_cores and m >= 2 * sub:
            nb = max(nb, 2)             # keep both TensorCores busy on v7x
        return _round_up(_cdiv(m, nb), sub)

    # ---- Path A: resident weight panel, 1-D grid over M ------------------
    resident = (not force_tiled
                and k * n * cbytes <= 4 * 1024 * 1024
                and k <= 2048 and n <= 2048)

    if resident:
        tm = pick_tm(tm_max)
        mp = _round_up(m, tm)
        if mp != m:
            xc = jnp.pad(xc, ((0, mp - m), (0, 0)))
        grid = (mp // tm,)

        cost = pl.CostEstimate(
            flops=2 * mp * k * n,
            bytes_accessed=int(mp * k * cbytes + k * n * cbytes
                               + n * 4 + mp * n * out_bytes),
            transcendentals=0,
        )

        out = pl.pallas_call(
            _ffn_resident_kernel,
            out_shape=jax.ShapeDtypeStruct((mp, n), out_dtype),
            grid_spec=pltpu.PrefetchScalarGridSpec(
                num_scalar_prefetch=0,
                grid=grid,
                in_specs=[
                    pl.BlockSpec((tm, k), lambda i: (i, 0)),   # X slab
                    pl.BlockSpec((k, n), lambda i: (0, 0)),    # W resident
                    pl.BlockSpec((1, n), lambda i: (0, 0)),    # bias resident
                ],
                out_specs=pl.BlockSpec((tm, n), lambda i: (i, 0)),
            ),
            compiler_params=pltpu.CompilerParams(
                dimension_semantics=("parallel",),
                vmem_limit_bytes=vmem_limit,
            ),
            cost_estimate=cost,
        )(xc, wc, b2d)

        return out[:m] if mp != m else out

    # ---- Path B: general tiled GEMM with K reduction ----------------------
    def lane_tile(dim, tmax):
        # Full-dim block needs no 128 alignment and no padding.
        if dim <= tmax:
            return dim
        return _round_up(_cdiv(dim, _cdiv(dim, tmax)), 128)

    tk = lane_tile(k, tk_max)
    tn = lane_tile(n, tn_max)
    tm = pick_tm(tm_max)

    mp = _round_up(m, tm)
    kp = _round_up(k, tk)
    np_ = _round_up(n, tn)

    if (mp, kp) != (m, k):
        xc = jnp.pad(xc, ((0, mp - m), (0, kp - k)))
    if (kp, np_) != (k, n):
        wc = jnp.pad(wc, ((0, kp - k), (0, np_ - n)))
    if np_ != n:
        b2d = jnp.pad(b2d, ((0, 0), (0, np_ - n)))

    grid = (mp // tm, np_ // tn, kp // tk)

    # Actual HBM traffic: X re-read per N tile, W re-read per M tile.
    bytes_accessed = (
        mp * kp * cbytes * (np_ // tn)
        + kp * np_ * cbytes * (mp // tm)
        + np_ * 4
        + mp * np_ * out_bytes
    )
    cost = pl.CostEstimate(
        flops=2 * mp * kp * np_,
        bytes_accessed=int(bytes_accessed),
        transcendentals=0,
    )

    out = pl.pallas_call(
        _ffn_tiled_kernel,
        out_shape=jax.ShapeDtypeStruct((mp, np_), out_dtype),
        grid_spec=pltpu.PrefetchScalarGridSpec(
            num_scalar_prefetch=0,
            grid=grid,
            in_specs=[
                pl.BlockSpec((tm, tk), lambda i, j, kk: (i, kk)),   # X tile
                pl.BlockSpec((tk, tn), lambda i, j, kk: (kk, j)),   # W tile
                pl.BlockSpec((1, tn), lambda i, j, kk: (0, j)),     # bias
            ],
            out_specs=pl.BlockSpec((tm, tn), lambda i, j, kk: (i, j)),
            scratch_shapes=[pltpu.VMEM((tm, tn), jnp.float32)],
        ),
        compiler_params=pltpu.CompilerParams(
            dimension_semantics=("parallel", "parallel", "arbitrary"),
            vmem_limit_bytes=vmem_limit,
        ),
        cost_estimate=cost,
    )(xc, wc, b2d)

    if (mp, np_) != (m, n):
        out = out[:m, :n]
    return out


def bga_ffn_forward(x, w, b, *, compute_dtype=jnp.bfloat16, out_dtype=None,
                    use_pallas=None, force_tiled=False):
    """x: (..., K), w: (K, N), b: (N,) -> relu(x @ w + b) with shape (..., N)."""
    *lead, k = x.shape
    n = w.shape[1]
    x2d = x.reshape(-1, k)
    m = x2d.shape[0]

    if use_pallas is None:
        # Below ~4 MFLOP the fixed pallas_call overhead dominates.
        use_pallas = (2 * m * k * n) >= (1 << 22)

    if use_pallas:
        out = _pallas_ffn_2d(x2d, w, b, compute_dtype=compute_dtype,
                             out_dtype=out_dtype, force_tiled=force_tiled)
    else:
        acc = jnp.dot(x2d.astype(compute_dtype), w.astype(compute_dtype),
                      preferred_element_type=jnp.float32)
        od = x.dtype if out_dtype is None else out_dtype
        out = jnp.maximum(acc + b.astype(jnp.float32), 0.0).astype(od)

    return out.reshape(*lead, n)


def init_params(key, in_channels, hidden_channels):
    """Kaiming-uniform weight (PyG Linear 'kaiming_uniform') + zero bias."""
    # TODO(synk): PyTorch's default (Lazy)Linear init differs slightly
    # (a=sqrt(5) + uniform bias); this matches the PyG 'kaiming_uniform'
    # + 'zeros' initializers the module requests, not bit-for-bit torch.
    bound = jnp.sqrt(6.0 / in_channels)
    w_pt = jax.random.uniform(
        key, (hidden_channels, in_channels), jnp.float32, -bound, bound)
    w = jnp.transpose(w_pt)                     # (K, N) for x @ W
    b = jnp.zeros((hidden_channels,), jnp.float32)
    return w, b


if __name__ == "__main__":
    # Small shapes consistent with the module: batch=2, seq=8, in=32, hidden=32.
    batch, seq, in_channels, hidden_channels = 2, 8, 32, 32

    key = jax.random.PRNGKey(0)
    kx, kw = jax.random.split(key)
    x = jax.random.normal(kx, (batch, seq, in_channels), jnp.float32)
    w, b = init_params(kw, in_channels, hidden_channels)

    # Reference: same bf16-rounded inputs, f32 accumulation (matches MXU path).
    x_c = x.astype(jnp.bfloat16).astype(jnp.float32)
    w_c = w.astype(jnp.bfloat16).astype(jnp.float32)
    ref = jnp.maximum(jnp.einsum("bsk,kn->bsn", x_c, w_c) + b, 0.0)

    # Path A (resident weight panel) — the path CoBFormer shapes actually hit.
    out_a = bga_ffn_forward(x, w, b, use_pallas=True)
    jax.block_until_ready(out_a)
    assert out_a.shape == (batch, seq, hidden_channels)
    assert jnp.allclose(out_a, ref, atol=1e-3, rtol=1e-3), "resident path mismatch"

    # Path B (general tiled GEMM) — force it so the K-reduction kernel is
    # exercised too.
    out_b = bga_ffn_forward(x, w, b, use_pallas=True, force_tiled=True)
    jax.block_until_ready(out_b)
    assert out_b.shape == (batch, seq, hidden_channels)
    assert jnp.allclose(out_b, ref, atol=1e-3, rtol=1e-3), "tiled path mismatch"

    print("KERNEL_OK")
</pallas_src>

<mosaic_0001>
module attributes {stable_mosaic.version = 11 : i64} {
  func.func @_ffn_resident_kernel(%arg0: i32, %arg1: memref<16x32xbf16, #tpu.memory_space<vmem>>, %arg2: memref<32x32xbf16, #tpu.memory_space<vmem>>, %arg3: memref<1x32xf32, #tpu.memory_space<vmem>>, %arg4: memref<16x32xf32, #tpu.memory_space<vmem>>) attributes {dimension_semantics = [#tpu.dimension_semantics<parallel>], iteration_bounds = array<i64: 1>, scalar_prefetch = 0 : i64, scratch_operands = 0 : i64, tpu.core_type = #tpu.core_type<tc>, window_params = [{transform_indices = @transform_0, window_bounds = array<i64: 16, 32>}, {pipeline_mode = #tpu.pipeline_mode<synchronous>, transform_indices = @transform_1, window_bounds = array<i64: 32, 32>}, {pipeline_mode = #tpu.pipeline_mode<synchronous>, transform_indices = @transform_2, window_bounds = array<i64: 1, 32>}, {transform_indices = @transform_3, window_bounds = array<i64: 16, 32>}]} {
    %c0 = arith.constant 0 : index
    %c0_0 = arith.constant 0 : index
    %0 = vector.load %arg1[%c0, %c0_0] : memref<16x32xbf16, #tpu.memory_space<vmem>>, vector<16x32xbf16>
    %c0_1 = arith.constant 0 : index
    %c0_2 = arith.constant 0 : index
    %1 = vector.load %arg2[%c0_1, %c0_2] : memref<32x32xbf16, #tpu.memory_space<vmem>>, vector<32x32xbf16>
    %cst = arith.constant dense<0.000000e+00> : vector<16x32xf32>
    %2 = tpu.matmul %0, %1, %cst {dimension_numbers = #tpu.dot_dimension_numbers<[1], [0], [0], [1], [0, 0, 1, 1], [], []>} : vector<16x32xbf16>, vector<32x32xbf16>, vector<16x32xf32> -> vector<16x32xf32>
    %c0_3 = arith.constant 0 : index
    %c0_4 = arith.constant 0 : index
    %3 = vector.load %arg3[%c0_3, %c0_4] : memref<1x32xf32, #tpu.memory_space<vmem>>, vector<1x32xf32>
    %4 = vector.broadcast %3 : vector<1x32xf32> to vector<16x32xf32>
    %5 = arith.addf %2, %4 : vector<16x32xf32>
    %cst_5 = arith.constant 0.000000e+00 : f32
    %6 = vector.broadcast %cst_5 : f32 to vector<16x32xf32>
    %7 = arith.maximumf %5, %6 : vector<16x32xf32>
    %c0_6 = arith.constant 0 : index
    %c0_7 = arith.constant 0 : index
    %8 = vector.load %arg4[%c0_6, %c0_7] : memref<16x32xf32, #tpu.memory_space<vmem>>, vector<16x32xf32>
    tpu.vector_store %arg4[%c0_6, %c0_7], %7 {strides = array<i32>} : memref<16x32xf32, #tpu.memory_space<vmem>>, vector<16x32xf32>,
    return
  }
  func.func @transform_0(%arg0: i32) -> (i32, i32) {
    %c0_i32 = arith.constant 0 : i32
    %c0_i32_0 = arith.constant 0 : i32
    return %arg0, %c0_i32 : i32, i32
  }
  func.func @transform_1(%arg0: i32) -> (i32, i32) {
    %c0_i32 = arith.constant 0 : i32
    %c0_i32_0 = arith.constant 0 : i32
    %c0_i32_1 = arith.constant 0 : i32
    return %c0_i32, %c0_i32_0 : i32, i32
  }
  func.func @transform_2(%arg0: i32) -> (i32, i32) {
    %c0_i32 = arith.constant 0 : i32
    %c0_i32_0 = arith.constant 0 : i32
    %c0_i32_1 = arith.constant 0 : i32
    return %c0_i32, %c0_i32_0 : i32, i32
  }
  func.func @transform_3(%arg0: i32) -> (i32, i32) {
    %c0_i32 = arith.constant 0 : i32
    %c0_i32_0 = arith.constant 0 : i32
    return %arg0, %c0_i32 : i32, i32
  }
}

</mosaic_0001>

<bundles_post_ra>
// kernel: tpu_custom_call.1
= control target key start
LH: loop header
LB: loop body
LE: loop exit
PB: predicated region body
PF: predicated region fallthrough
CT: control target
= control target key end

     0   :  { %8 = vsyncpa [#allocation3], 0  ;;  %s309_s0 = inlined_call_operand.hbm [shape: bf16[16,32], index: 0, kind: input, shape index: {}]   ;;  %s310_s1 = inlined_call_operand.hbm [shape: bf16[32,32], index: 1, kind: input, shape index: {}]   ;;  %s311_s2 = inlined_call_operand.vmem [shape: f32[1,32], index: 2, kind: input, shape index: {}]   ;;  %s312_s3 = inlined_call_operand.hbm [shape: f32[16,32], index: 3, kind: output, shape index: {}]  }
   0x1   :  { %9 = vsyncpa [#allocation6], 0 }
   0x2   :  { %10 = vsyncpa [#allocation4], 0  ;;  %s241_s12 = smov [#allocation2]   ;;  %s169_s16 = scalar_lea.hbm %s309_s0, 128 }
   0x3   :  { %s16_s13 = sshll.u32 %s241_s12, 4  ;;  %p170_p0 = scmp.ne.s32.totalorder %s309_s0, %s169_s16  ;;  %s17_s13 = int_to_ptr.vmem [resolvable:$true] %s16_s13 }
   0x4   :  { %p173_p1 = scmp.lt.u32.totalorder %s169_s16, %s309_s0 }
   0x6   :  { %p175_p2 = pnand %p173_p1, %p170_p0 }
   0x8   :  { %178 = shalt.err (!%p175_p2)
}
   0x9   :  { %s179_s21 = scalar_lea.vmem %s17_s13, 128  ;;  %p184_p4 = scmp.lt.s32.totalorder %s17_s13, %s17_s13 }
   0xa   :  { %p180_p3 = scmp.ne.s32.totalorder %s17_s13, %s179_s21  ;;  %p185_p5 = scmp.lt.s32.totalorder %s179_s21, %s179_s21 }
   0xc   :  { %p186_p6 = por %p185_p5, %p184_p4 }
   0xe   :  { %p187_p7 = pnand %p186_p6, %p180_p3 }
  0x10   :  { %190 = shalt.err (!%p187_p7)
}
  0x11   :  { %s242_s22 = smov 64   ;;  %s243_s23 = smov 4  }
  0x12   :  { %22 = dma.hbm_to_vmem [thread:$0]  %s309_s0, 128, %s17_s13, [#allocation3], %s242_s22, %s242_s22, %s243_s23  }
  0x13   :  { %s244_s26 = smov [#allocation5]   ;;  %s191_s30 = scalar_lea.hbm %s310_s1, 256 }
  0x14   :  { %s28_s27 = sshll.u32 %s244_s26, 4  ;;  %p192_p8 = scmp.ne.s32.totalorder %s310_s1, %s191_s30  ;;  %s29_s27 = int_to_ptr.vmem [resolvable:$true] %s28_s27 }
  0x15   :  { %p195_p9 = scmp.lt.u32.totalorder %s191_s30, %s310_s1 }
  0x17   :  { %p197_p10 = pnand %p195_p9, %p192_p8 }
  0x19   :  { %200 = shalt.err (!%p197_p10)
}
  0x1a   :  { %s201_s8 = scalar_lea.vmem %s29_s27, 256  ;;  %p206_p12 = scmp.lt.s32.totalorder %s29_s27, %s29_s27 }
  0x1b   :  { %p202_p11 = scmp.ne.s32.totalorder %s29_s27, %s201_s8  ;;  %p207_p13 = scmp.lt.s32.totalorder %s201_s8, %s201_s8 }
  0x1d   :  { %p208_p0 = por %p207_p13, %p206_p12 }
  0x1f   :  { %p209_p1 = pnand %p208_p0, %p202_p11 }
  0x21   :  { %212 = shalt.err (!%p209_p1)
}
  0x22   :  { %34 = dma.hbm_to_vmem [thread:$0]  %s310_s1, 256, %s29_s27, [#allocation6], %s242_s22, %s242_s22, %s243_s23  }
  0x23   :  { %235 = dma.done.wait [#allocation3], 128  }
  0x24   :  { %236 = vsyncadd [#allocation3], 4294967168 }
  0x25   :  { %237 = dma.done.wait [#allocation6], 256  }
  0x26   :  { %238 = vsyncadd [#allocation6], 4294967040  ;;  %v245_v0 = vmov 0.0   ;;  %vm246_vm0 = vmmov 0   ;;  %v166_v1 = vld [vmem:[#allocation5] sm:$0xff]   ;;  %v167_v2 = vld [vmem:[#allocation5 + $0x8] sm:$0xff]  }
  0x27   :  { %149 = vmatprep.subr.bf16.mxu0 %v245_v0  ;;  %153 = vmatprep.mubr.msk.bf16.mxu0 %vm246_vm0, %v245_v0  ;;  %v168_v3 = vld [vmem:[#allocation2] sm:$0xff]   ;;  %vm74_vm1 = vcmask 261120   ;;  %s247_s1 = smov [#allocation7]  }
  0x28   :  { %150 = vmatpush3.bf16.msra.mxu0 %v166_v1  ;;  %v141_v4 = vld [vmem:[%s311_s2] ss:$0 sm:$0xff]  ;;  %s128_s12 = sshll.u32 %s247_s1, 4  ;;  %s129_s12 = int_to_ptr.vmem [resolvable:$true] %s128_s12 }
  0x29   :  { %151 = vmatprep.subr.bf16.mxu0 %v245_v0  ;;  %s213_s13 = scalar_lea.vmem %s129_s12, 256  ;;  %p218_p3 = scmp.lt.s32.totalorder %s129_s12, %s129_s12 }
  0x2a   :  { %p214_p2 = scmp.ne.s32.totalorder %s129_s12, %s213_s13  ;;  %p219_p4 = scmp.lt.s32.totalorder %s213_s13, %s213_s13 }
  0x2c   :  { %152 = vmatpush3.bf16.msra.mxu0 %v167_v2  ;;  %p220_p5 = por %p219_p4, %p218_p3 }
  0x2e   :  { %p221_p6 = pnand %p220_p5, %p214_p2 }
  0x2f   :  { %154 = vmatmul.mubr.msk.bf16.vlgmr.msra.gmra.mrb[0].mxu0 %vm74_vm1, %v168_v3 }
 0x102   :  { %v112_v5 = vpop.f32.mrb[0].mxu0 }
 0x103   :  { %v113_v6 = vadd.f32 %v141_v4, %v112_v5  ;;  %v155_v7 = vpop.f32.mrb[1].mxu0 }
 0x104   :  { %v115_v8 = vpop.f32.mrb[2].mxu0 }
 0x105   :  { %v119_v9 = vmax.f32 %v113_v6, 0.0  ;;  %v116_v10 = vadd.f32 %v141_v4, %v115_v8  ;;  %v156_v11 = vpop.f32.mrb[3].mxu0 }
 0x107   :  { %121 = vst.msk [vmem:[#allocation7] sm:$0xff] %vm74_vm1, %v119_v9  ;;  %v120_v12 = vmax.f32 %v116_v10, 0.0 }
 0x109   :  { %122 = vst.msk [vmem:[#allocation7 + $0x8] sm:$0xff] %vm74_vm1, %v120_v12 }
 0x10a   :  { %224 = shalt.err (!%p221_p6)
}
 0x10b   :  { %s225_s15 = scalar_lea.hbm %s312_s3, 256 }
 0x10c   :  { %p226_p7 = scmp.ne.s32.totalorder %s312_s3, %s225_s15  ;;  %p229_p8 = scmp.lt.u32.totalorder %s225_s15, %s312_s3 }
 0x10e   :  { %p231_p9 = pnand %p229_p8, %p226_p7 }
 0x110   :  { %234 = shalt.err (!%p231_p9)
}
 0x111   :  { %s248_s20 = smov 128   ;;  %s249_s21 = smov 8  }
 0x112   :  { %134 = dma.vmem_to_hbm [thread:$0]  %s129_s12, 256, %s312_s3, [#allocation4], %s248_s20, %s248_s20, %s249_s21  }
 0x113   :  { %239 = dma.done.wait [#allocation4], 256  }
 0x114   :  { %240 = vsyncadd [#allocation4], 4294967040 }
 0x115   :  { %138 = vsyncpa [#allocation3], 1 }
 0x116   :  { %139 = vsyncpa [#allocation6], 1 }
 0x117   :  { %140 = vsyncpa [#allocation4], 1 }

</bundles_post_ra>
